<compile_context>
chip_gen: v7x
topology: tpu7x:2x2x1
jax: 0.10.0
libtpu: 0.0.40
codegen_flags: <defaults>
</compile_context>

<pallas_src>
import math
from functools import partial

import jax
import jax.numpy as jnp
from jax.experimental import pallas as pl
from jax.experimental.pallas import tpu as pltpu


def _round_up(v, m):
    return (v + m - 1) // m * m


def _vembed_kernel(x_ref, w_ref, b_ref, o_ref, *, pt, ph, hb):
    # x_ref: (1, pt, hb, ph, Wp, pw*C)  raw channels-last patch rows
    # w_ref: (pt, ph, pw*C, Np)         weight.T split along K = (pt, ph, pw*C)
    # b_ref: (1, Np)
    # o_ref: (1, hb, Wp, Np)
    wp = o_ref.shape[2]
    npad = o_ref.shape[3]
    # Hoist bias broadcast out of the loop (JAX does not CSE broadcast_in_dim).
    bias = jnp.broadcast_to(b_ref[...], (wp, npad))

    for h in range(hb):              # static unroll (bounded at tile selection)
        acc = None
        for a in range(pt):
            for b in range(ph):
                part = jnp.dot(x_ref[0, a, h, b],          # (Wp, pw*C)
                               w_ref[a, b],                # (pw*C, Np)
                               preferred_element_type=jnp.float32)
                acc = part if acc is None else acc + part
        o_ref[0, h] = (acc + bias).astype(o_ref.dtype)


def _choose_hb(hp, wp, pwc, npad, pt, ph, itemsize,
               vmem_budget_bytes=12 * 1024 * 1024, max_matmuls=64):
    """Largest Hb (divisor of hp) whose double-buffered tiles fit the budget."""
    w_vmem = pt * ph * _round_up(pwc, 8) * npad * 4
    best = 1
    for hb in range(1, hp + 1):
        if hp % hb:
            continue
        if hb * pt * ph > max_matmuls:       # cap static unroll / code size
            break
        # Account for VMEM (8,128)-tile padding of the lane-sparse x tiles.
        x_vmem = pt * hb * ph * _round_up(wp, 8) * _round_up(pwc, 128) * itemsize
        o_vmem = hb * _round_up(wp, 8) * npad * itemsize
        if 2 * (x_vmem + o_vmem) + w_vmem <= vmem_budget_bytes:
            best = hb
    return best


class VisualEmbeddingsPallas:
    """y = Linear(patchify(x)); x is (T, H, W, C) channels-last."""

    def __init__(self, visual_dim, model_dim, patch_size, key):
        self.patch_size = tuple(patch_size)
        self.visual_dim = visual_dim
        self.model_dim = model_dim
        pt, ph, pw = self.patch_size
        in_features = pt * ph * pw * visual_dim

        kw, kb = jax.random.split(key)
        bound = 1.0 / math.sqrt(in_features)
        # PyTorch nn.Linear layout: weight (out_features, in_features), bias (out,).
        self.weight = jax.random.uniform(
            kw, (model_dim, in_features), jnp.float32, -bound, bound)
        self.bias = jax.random.uniform(
            kb, (model_dim,), jnp.float32, -bound, bound)

        # One-time kernel-side parameter prep (pad N to lane-dense, transpose,
        # split K into (pt, ph, pw*C) to match the PyTorch flatten order).
        self.n_padded = _round_up(model_dim, 128)
        pad_n = self.n_padded - model_dim
        w_pad = jnp.pad(self.weight, ((0, pad_n), (0, 0)))          # (Np, K)
        self._w_r = jnp.asarray(
            w_pad.T.reshape(pt, ph, pw * visual_dim, self.n_padded))
        self._b_p = jnp.pad(self.bias, (0, pad_n)).reshape(1, self.n_padded)

    def __call__(self, x):
        T, H, W, C = x.shape
        pt, ph, pw = self.patch_size
        assert C == self.visual_dim
        assert T % pt == 0 and H % ph == 0 and W % pw == 0
        tp, hp, wp = T // pt, H // ph, W // pw
        pwc = pw * C
        k = pt * ph * pwc
        npad = self.n_padded

        # Free (row-major) reshape -- NO transpose, no extra HBM traffic.
        x6 = x.reshape(tp, pt, hp, ph, wp, pwc)

        hb = _choose_hb(hp, wp, pwc, npad, pt, ph, x.dtype.itemsize)
        grid = (tp, hp // hb)

        m = tp * hp * wp
        cost = pl.CostEstimate(
            flops=2 * m * k * npad,
            transcendentals=0,
            bytes_accessed=(x6.size * x.dtype.itemsize
                            + self._w_r.size * 4 + self._b_p.size * 4
                            + m * npad * x.dtype.itemsize),
        )

        out = pl.pallas_call(
            partial(_vembed_kernel, pt=pt, ph=ph, hb=hb),
            out_shape=jax.ShapeDtypeStruct((tp, hp, wp, npad), x.dtype),
            grid=grid,
            in_specs=[
                # x tile: last two block dims equal the full array extents.
                pl.BlockSpec((1, pt, hb, ph, wp, pwc),
                             lambda i, j: (i, 0, j, 0, 0, 0)),
                # grid-invariant weight: constant index_map -> DMA'd once.
                pl.BlockSpec((pt, ph, pwc, npad), lambda i, j: (0, 0, 0, 0)),
                pl.BlockSpec((1, npad), lambda i, j: (0, 0)),
            ],
            out_specs=pl.BlockSpec((1, hb, wp, npad),
                                   lambda i, j: (i, j, 0, 0)),
            compiler_params=pltpu.CompilerParams(
                dimension_semantics=("parallel", "parallel"),
                vmem_limit_bytes=48 * 1024 * 1024,
            ),
            cost_estimate=cost,
        )(x6, self._w_r, self._b_p)

        if npad != self.model_dim:
            out = out[..., : self.model_dim]
        return out


if __name__ == "__main__":
    key = jax.random.PRNGKey(0)
    k_in, k_param = jax.random.split(key)

    # Small shapes consistent with the module.
    visual_dim = 4
    model_dim = 32
    patch_size = (1, 2, 2)
    T, H, W = 2, 16, 16

    x = jax.random.normal(k_in, (T, H, W, visual_dim), jnp.float32)

    module = VisualEmbeddingsPallas(visual_dim, model_dim, patch_size, k_param)
    out = jax.block_until_ready(module(x))

    # Reference in plain JAX (same math as the PyTorch forward).
    pt, ph, pw = patch_size
    ref = x.reshape(T // pt, pt, H // ph, ph, W // pw, pw, visual_dim)
    ref = jnp.transpose(ref, (0, 2, 4, 1, 3, 5, 6))
    ref = ref.reshape(T // pt, H // ph, W // pw, pt * ph * pw * visual_dim)
    ref = ref @ module.weight.T + module.bias

    assert out.shape == (T // pt, H // ph, W // pw, model_dim), out.shape
    err = float(jnp.max(jnp.abs(out - ref)))
    assert jnp.allclose(out, ref, atol=1e-4, rtol=1e-4), err

    print("KERNEL_OK")
</pallas_src>

<mosaic_0001>
module attributes {stable_mosaic.version = 11 : i64} {
  func.func @_vembed_kernel(%arg0: i32, %arg1: i32, %arg2: memref<1x1x8x2x8x8xf32, #tpu.memory_space<vmem>>, %arg3: memref<1x2x8x128xf32, #tpu.memory_space<vmem>>, %arg4: memref<1x128xf32, #tpu.memory_space<vmem>>, %arg5: memref<1x8x8x128xf32, #tpu.memory_space<vmem>>) attributes {dimension_semantics = [#tpu.dimension_semantics<parallel>, #tpu.dimension_semantics<parallel>], iteration_bounds = array<i64: 2, 1>, scalar_prefetch = 0 : i64, scratch_operands = 0 : i64, tpu.core_type = #tpu.core_type<tc>, window_params = [{transform_indices = @transform_0, window_bounds = array<i64: 1, 1, 8, 2, 8, 8>}, {pipeline_mode = #tpu.pipeline_mode<synchronous>, transform_indices = @transform_1, window_bounds = array<i64: 1, 2, 8, 128>}, {pipeline_mode = #tpu.pipeline_mode<synchronous>, transform_indices = @transform_2, window_bounds = array<i64: 1, 128>}, {transform_indices = @transform_3, window_bounds = array<i64: 1, 8, 8, 128>}]} {
    %c0 = arith.constant 0 : index
    %c0_0 = arith.constant 0 : index
    %0 = vector.load %arg4[%c0, %c0_0] : memref<1x128xf32, #tpu.memory_space<vmem>>, vector<1x128xf32>
    %1 = vector.shape_cast %0 : vector<1x128xf32> to vector<1x128xf32>
    %2 = vector.broadcast %1 : vector<1x128xf32> to vector<8x128xf32>
    %c0_1 = arith.constant 0 : index
    %c0_2 = arith.constant 0 : index
    %c0_3 = arith.constant 0 : index
    %c0_4 = arith.constant 0 : index
    %c0_5 = arith.constant 0 : index
    %c0_6 = arith.constant 0 : index
    %3 = vector.load %arg2[%c0_1, %c0_2, %c0_3, %c0_4, %c0_5, %c0_6] : memref<1x1x8x2x8x8xf32, #tpu.memory_space<vmem>>, vector<1x1x1x1x8x8xf32>
    %4 = vector.shape_cast %3 : vector<1x1x1x1x8x8xf32> to vector<8x8xf32>
    %c0_7 = arith.constant 0 : index
    %c0_8 = arith.constant 0 : index
    %c0_9 = arith.constant 0 : index
    %c0_10 = arith.constant 0 : index
    %5 = vector.load %arg3[%c0_7, %c0_8, %c0_9, %c0_10] : memref<1x2x8x128xf32, #tpu.memory_space<vmem>>, vector<1x1x8x128xf32>
    %6 = vector.shape_cast %5 : vector<1x1x8x128xf32> to vector<8x128xf32>
    %cst = arith.constant dense<0.000000e+00> : vector<8x128xf32>
    %7 = tpu.matmul %4, %6, %cst {dimension_numbers = #tpu.dot_dimension_numbers<[1], [0], [0], [1], [0, 0, 1, 1], [], []>} : vector<8x8xf32>, vector<8x128xf32>, vector<8x128xf32> -> vector<8x128xf32>
    %c0_11 = arith.constant 0 : index
    %c0_12 = arith.constant 0 : index
    %c0_13 = arith.constant 0 : index
    %c1 = arith.constant 1 : index
    %c0_14 = arith.constant 0 : index
    %c0_15 = arith.constant 0 : index
    %8 = vector.load %arg2[%c0_11, %c0_12, %c0_13, %c1, %c0_14, %c0_15] : memref<1x1x8x2x8x8xf32, #tpu.memory_space<vmem>>, vector<1x1x1x1x8x8xf32>
    %9 = vector.shape_cast %8 : vector<1x1x1x1x8x8xf32> to vector<8x8xf32>
    %c0_16 = arith.constant 0 : index
    %c1_17 = arith.constant 1 : index
    %c0_18 = arith.constant 0 : index
    %c0_19 = arith.constant 0 : index
    %10 = vector.load %arg3[%c0_16, %c1_17, %c0_18, %c0_19] : memref<1x2x8x128xf32, #tpu.memory_space<vmem>>, vector<1x1x8x128xf32>
    %11 = vector.shape_cast %10 : vector<1x1x8x128xf32> to vector<8x128xf32>
    %cst_20 = arith.constant dense<0.000000e+00> : vector<8x128xf32>
    %12 = tpu.matmul %9, %11, %cst_20 {dimension_numbers = #tpu.dot_dimension_numbers<[1], [0], [0], [1], [0, 0, 1, 1], [], []>} : vector<8x8xf32>, vector<8x128xf32>, vector<8x128xf32> -> vector<8x128xf32>
    %13 = arith.addf %7, %12 : vector<8x128xf32>
    %14 = arith.addf %13, %2 : vector<8x128xf32>
    %c0_21 = arith.constant 0 : index
    %c0_22 = arith.constant 0 : index
    %c0_23 = arith.constant 0 : index
    %c0_24 = arith.constant 0 : index
    %15 = vector.load %arg5[%c0_21, %c0_22, %c0_23, %c0_24] : memref<1x8x8x128xf32, #tpu.memory_space<vmem>>, vector<1x1x8x128xf32>
    %16 = vector.shape_cast %15 : vector<1x1x8x128xf32> to vector<8x128xf32>
    %17 = vector.shape_cast %14 : vector<8x128xf32> to vector<1x1x8x128xf32>
    tpu.vector_store %arg5[%c0_21, %c0_22, %c0_23, %c0_24], %17 {strides = array<i32>} : memref<1x8x8x128xf32, #tpu.memory_space<vmem>>, vector<1x1x8x128xf32>,
    %c0_25 = arith.constant 0 : index
    %c0_26 = arith.constant 0 : index
    %c1_27 = arith.constant 1 : index
    %c0_28 = arith.constant 0 : index
    %c0_29 = arith.constant 0 : index
    %c0_30 = arith.constant 0 : index
    %18 = vector.load %arg2[%c0_25, %c0_26, %c1_27, %c0_28, %c0_29, %c0_30] : memref<1x1x8x2x8x8xf32, #tpu.memory_space<vmem>>, vector<1x1x1x1x8x8xf32>
    %19 = vector.shape_cast %18 : vector<1x1x1x1x8x8xf32> to vector<8x8xf32>
    %c0_31 = arith.constant 0 : index
    %c0_32 = arith.constant 0 : index
    %c0_33 = arith.constant 0 : index
    %c0_34 = arith.constant 0 : index
    %20 = vector.load %arg3[%c0_31, %c0_32, %c0_33, %c0_34] : memref<1x2x8x128xf32, #tpu.memory_space<vmem>>, vector<1x1x8x128xf32>
    %21 = vector.shape_cast %20 : vector<1x1x8x128xf32> to vector<8x128xf32>
    %cst_35 = arith.constant dense<0.000000e+00> : vector<8x128xf32>
    %22 = tpu.matmul %19, %21, %cst_35 {dimension_numbers = #tpu.dot_dimension_numbers<[1], [0], [0], [1], [0, 0, 1, 1], [], []>} : vector<8x8xf32>, vector<8x128xf32>, vector<8x128xf32> -> vector<8x128xf32>
    %c0_36 = arith.constant 0 : index
    %c0_37 = arith.constant 0 : index
    %c1_38 = arith.constant 1 : index
    %c1_39 = arith.constant 1 : index
    %c0_40 = arith.constant 0 : index
    %c0_41 = arith.constant 0 : index
    %23 = vector.load %arg2[%c0_36, %c0_37, %c1_38, %c1_39, %c0_40, %c0_41] : memref<1x1x8x2x8x8xf32, #tpu.memory_space<vmem>>, vector<1x1x1x1x8x8xf32>
    %24 = vector.shape_cast %23 : vector<1x1x1x1x8x8xf32> to vector<8x8xf32>
    %c0_42 = arith.constant 0 : index
    %c1_43 = arith.constant 1 : index
    %c0_44 = arith.constant 0 : index
    %c0_45 = arith.constant 0 : index
    %25 = vector.load %arg3[%c0_42, %c1_43, %c0_44, %c0_45] : memref<1x2x8x128xf32, #tpu.memory_space<vmem>>, vector<1x1x8x128xf32>
    %26 = vector.shape_cast %25 : vector<1x1x8x128xf32> to vector<8x128xf32>
    %cst_46 = arith.constant dense<0.000000e+00> : vector<8x128xf32>
    %27 = tpu.matmul %24, %26, %cst_46 {dimension_numbers = #tpu.dot_dimension_numbers<[1], [0], [0], [1], [0, 0, 1, 1], [], []>} : vector<8x8xf32>, vector<8x128xf32>, vector<8x128xf32> -> vector<8x128xf32>
    %28 = arith.addf %22, %27 : vector<8x128xf32>
    %29 = arith.addf %28, %2 : vector<8x128xf32>
    %c0_47 = arith.constant 0 : index
    %c1_48 = arith.constant 1 : index
    %c0_49 = arith.constant 0 : index
    %c0_50 = arith.constant 0 : index
    %30 = vector.load %arg5[%c0_47, %c1_48, %c0_49, %c0_50] : memref<1x8x8x128xf32, #tpu.memory_space<vmem>>, vector<1x1x8x128xf32>
    %31 = vector.shape_cast %30 : vector<1x1x8x128xf32> to vector<8x128xf32>
    %32 = vector.shape_cast %29 : vector<8x128xf32> to vector<1x1x8x128xf32>
    tpu.vector_store %arg5[%c0_47, %c1_48, %c0_49, %c0_50], %32 {strides = array<i32>} : memref<1x8x8x128xf32, #tpu.memory_space<vmem>>, vector<1x1x8x128xf32>,
    %c0_51 = arith.constant 0 : index
    %c0_52 = arith.constant 0 : index
    %c2 = arith.constant 2 : index
    %c0_53 = arith.constant 0 : index
    %c0_54 = arith.constant 0 : index
    %c0_55 = arith.constant 0 : index
    %33 = vector.load %arg2[%c0_51, %c0_52, %c2, %c0_53, %c0_54, %c0_55] : memref<1x1x8x2x8x8xf32, #tpu.memory_space<vmem>>, vector<1x1x1x1x8x8xf32>
    %34 = vector.shape_cast %33 : vector<1x1x1x1x8x8xf32> to vector<8x8xf32>
    %c0_56 = arith.constant 0 : index
    %c0_57 = arith.constant 0 : index
    %c0_58 = arith.constant 0 : index
    %c0_59 = arith.constant 0 : index
    %35 = vector.load %arg3[%c0_56, %c0_57, %c0_58, %c0_59] : memref<1x2x8x128xf32, #tpu.memory_space<vmem>>, vector<1x1x8x128xf32>
    %36 = vector.shape_cast %35 : vector<1x1x8x128xf32> to vector<8x128xf32>
    %cst_60 = arith.constant dense<0.000000e+00> : vector<8x128xf32>
    %37 = tpu.matmul %34, %36, %cst_60 {dimension_numbers = #tpu.dot_dimension_numbers<[1], [0], [0], [1], [0, 0, 1, 1], [], []>} : vector<8x8xf32>, vector<8x128xf32>, vector<8x128xf32> -> vector<8x128xf32>
    %c0_61 = arith.constant 0 : index
    %c0_62 = arith.constant 0 : index
    %c2_63 = arith.constant 2 : index
    %c1_64 = arith.constant 1 : index
    %c0_65 = arith.constant 0 : index
    %c0_66 = arith.constant 0 : index
    %38 = vector.load %arg2[%c0_61, %c0_62, %c2_63, %c1_64, %c0_65, %c0_66] : memref<1x1x8x2x8x8xf32, #tpu.memory_space<vmem>>, vector<1x1x1x1x8x8xf32>
    %39 = vector.shape_cast %38 : vector<1x1x1x1x8x8xf32> to vector<8x8xf32>
    %c0_67 = arith.constant 0 : index
    %c1_68 = arith.constant 1 : index
    %c0_69 = arith.constant 0 : index
    %c0_70 = arith.constant 0 : index
    %40 = vector.load %arg3[%c0_67, %c1_68, %c0_69, %c0_70] : memref<1x2x8x128xf32, #tpu.memory_space<vmem>>, vector<1x1x8x128xf32>
    %41 = vector.shape_cast %40 : vector<1x1x8x128xf32> to vector<8x128xf32>
    %cst_71 = arith.constant dense<0.000000e+00> : vector<8x128xf32>
    %42 = tpu.matmul %39, %41, %cst_71 {dimension_numbers = #tpu.dot_dimension_numbers<[1], [0], [0], [1], [0, 0, 1, 1], [], []>} : vector<8x8xf32>, vector<8x128xf32>, vector<8x128xf32> -> vector<8x128xf32>
    %43 = arith.addf %37, %42 : vector<8x128xf32>
    %44 = arith.addf %43, %2 : vector<8x128xf32>
    %c0_72 = arith.constant 0 : index
    %c2_73 = arith.constant 2 : index
    %c0_74 = arith.constant 0 : index
    %c0_75 = arith.constant 0 : index
    %45 = vector.load %arg5[%c0_72, %c2_73, %c0_74, %c0_75] : memref<1x8x8x128xf32, #tpu.memory_space<vmem>>, vector<1x1x8x128xf32>
    %46 = vector.shape_cast %45 : vector<1x1x8x128xf32> to vector<8x128xf32>
    %47 = vector.shape_cast %44 : vector<8x128xf32> to vector<1x1x8x128xf32>
    tpu.vector_store %arg5[%c0_72, %c2_73, %c0_74, %c0_75], %47 {strides = array<i32>} : memref<1x8x8x128xf32, #tpu.memory_space<vmem>>, vector<1x1x8x128xf32>,
    %c0_76 = arith.constant 0 : index
    %c0_77 = arith.constant 0 : index
    %c3 = arith.constant 3 : index
    %c0_78 = arith.constant 0 : index
    %c0_79 = arith.constant 0 : index
    %c0_80 = arith.constant 0 : index
    %48 = vector.load %arg2[%c0_76, %c0_77, %c3, %c0_78, %c0_79, %c0_80] : memref<1x1x8x2x8x8xf32, #tpu.memory_space<vmem>>, vector<1x1x1x1x8x8xf32>
    %49 = vector.shape_cast %48 : vector<1x1x1x1x8x8xf32> to vector<8x8xf32>
    %c0_81 = arith.constant 0 : index
    %c0_82 = arith.constant 0 : index
    %c0_83 = arith.constant 0 : index
    %c0_84 = arith.constant 0 : index
    %50 = vector.load %arg3[%c0_81, %c0_82, %c0_83, %c0_84] : memref<1x2x8x128xf32, #tpu.memory_space<vmem>>, vector<1x1x8x128xf32>
    %51 = vector.shape_cast %50 : vector<1x1x8x128xf32> to vector<8x128xf32>
    %cst_85 = arith.constant dense<0.000000e+00> : vector<8x128xf32>
    %52 = tpu.matmul %49, %51, %cst_85 {dimension_numbers = #tpu.dot_dimension_numbers<[1], [0], [0], [1], [0, 0, 1, 1], [], []>} : vector<8x8xf32>, vector<8x128xf32>, vector<8x128xf32> -> vector<8x128xf32>
    %c0_86 = arith.constant 0 : index
    %c0_87 = arith.constant 0 : index
    %c3_88 = arith.constant 3 : index
    %c1_89 = arith.constant 1 : index
    %c0_90 = arith.constant 0 : index
    %c0_91 = arith.constant 0 : index
    %53 = vector.load %arg2[%c0_86, %c0_87, %c3_88, %c1_89, %c0_90, %c0_91] : memref<1x1x8x2x8x8xf32, #tpu.memory_space<vmem>>, vector<1x1x1x1x8x8xf32>
    %54 = vector.shape_cast %53 : vector<1x1x1x1x8x8xf32> to vector<8x8xf32>
    %c0_92 = arith.constant 0 : index
    %c1_93 = arith.constant 1 : index
    %c0_94 = arith.constant 0 : index
    %c0_95 = arith.constant 0 : index
    %55 = vector.load %arg3[%c0_92, %c1_93, %c0_94, %c0_95] : memref<1x2x8x128xf32, #tpu.memory_space<vmem>>, vector<1x1x8x128xf32>
    %56 = vector.shape_cast %55 : vector<1x1x8x128xf32> to vector<8x128xf32>
    %cst_96 = arith.constant dense<0.000000e+00> : vector<8x128xf32>
    %57 = tpu.matmul %54, %56, %cst_96 {dimension_numbers = #tpu.dot_dimension_numbers<[1], [0], [0], [1], [0, 0, 1, 1], [], []>} : vector<8x8xf32>, vector<8x128xf32>, vector<8x128xf32> -> vector<8x128xf32>
    %58 = arith.addf %52, %57 : vector<8x128xf32>
    %59 = arith.addf %58, %2 : vector<8x128xf32>
    %c0_97 = arith.constant 0 : index
    %c3_98 = arith.constant 3 : index
    %c0_99 = arith.constant 0 : index
    %c0_100 = arith.constant 0 : index
    %60 = vector.load %arg5[%c0_97, %c3_98, %c0_99, %c0_100] : memref<1x8x8x128xf32, #tpu.memory_space<vmem>>, vector<1x1x8x128xf32>
    %61 = vector.shape_cast %60 : vector<1x1x8x128xf32> to vector<8x128xf32>
    %62 = vector.shape_cast %59 : vector<8x128xf32> to vector<1x1x8x128xf32>
    tpu.vector_store %arg5[%c0_97, %c3_98, %c0_99, %c0_100], %62 {strides = array<i32>} : memref<1x8x8x128xf32, #tpu.memory_space<vmem>>, vector<1x1x8x128xf32>,
    %c0_101 = arith.constant 0 : index
    %c0_102 = arith.constant 0 : index
    %c4 = arith.constant 4 : index
    %c0_103 = arith.constant 0 : index
    %c0_104 = arith.constant 0 : index
    %c0_105 = arith.constant 0 : index
    %63 = vector.load %arg2[%c0_101, %c0_102, %c4, %c0_103, %c0_104, %c0_105] : memref<1x1x8x2x8x8xf32, #tpu.memory_space<vmem>>, vector<1x1x1x1x8x8xf32>
    %64 = vector.shape_cast %63 : vector<1x1x1x1x8x8xf32> to vector<8x8xf32>
    %c0_106 = arith.constant 0 : index
    %c0_107 = arith.constant 0 : index
    %c0_108 = arith.constant 0 : index
    %c0_109 = arith.constant 0 : index
    %65 = vector.load %arg3[%c0_106, %c0_107, %c0_108, %c0_109] : memref<1x2x8x128xf32, #tpu.memory_space<vmem>>, vector<1x1x8x128xf32>
    %66 = vector.shape_cast %65 : vector<1x1x8x128xf32> to vector<8x128xf32>
    %cst_110 = arith.constant dense<0.000000e+00> : vector<8x128xf32>
    %67 = tpu.matmul %64, %66, %cst_110 {dimension_numbers = #tpu.dot_dimension_numbers<[1], [0], [0], [1], [0, 0, 1, 1], [], []>} : vector<8x8xf32>, vector<8x128xf32>, vector<8x128xf32> -> vector<8x128xf32>
    %c0_111 = arith.constant 0 : index
    %c0_112 = arith.constant 0 : index
    %c4_113 = arith.constant 4 : index
    %c1_114 = arith.constant 1 : index
    %c0_115 = arith.constant 0 : index
    %c0_116 = arith.constant 0 : index
    %68 = vector.load %arg2[%c0_111, %c0_112, %c4_113, %c1_114, %c0_115, %c0_116] : memref<1x1x8x2x8x8xf32, #tpu.memory_space<vmem>>, vector<1x1x1x1x8x8xf32>
    %69 = vector.shape_cast %68 : vector<1x1x1x1x8x8xf32> to vector<8x8xf32>
    %c0_117 = arith.constant 0 : index
    %c1_118 = arith.constant 1 : index
    %c0_119 = arith.constant 0 : index
    %c0_120 = arith.constant 0 : index
    %70 = vector.load %arg3[%c0_117, %c1_118, %c0_119, %c0_120] : memref<1x2x8x128xf32, #tpu.memory_space<vmem>>, vector<1x1x8x128xf32>
    %71 = vector.shape_cast %70 : vector<1x1x8x128xf32> to vector<8x128xf32>
    %cst_121 = arith.constant dense<0.000000e+00> : vector<8x128xf32>
    %72 = tpu.matmul %69, %71, %cst_121 {dimension_numbers = #tpu.dot_dimension_numbers<[1], [0], [0], [1], [0, 0, 1, 1], [], []>} : vector<8x8xf32>, vector<8x128xf32>, vector<8x128xf32> -> vector<8x128xf32>
    %73 = arith.addf %67, %72 : vector<8x128xf32>
    %74 = arith.addf %73, %2 : vector<8x128xf32>
    %c0_122 = arith.constant 0 : index
    %c4_123 = arith.constant 4 : index
    %c0_124 = arith.constant 0 : index
    %c0_125 = arith.constant 0 : index
    %75 = vector.load %arg5[%c0_122, %c4_123, %c0_124, %c0_125] : memref<1x8x8x128xf32, #tpu.memory_space<vmem>>, vector<1x1x8x128xf32>
    %76 = vector.shape_cast %75 : vector<1x1x8x128xf32> to vector<8x128xf32>
    %77 = vector.shape_cast %74 : vector<8x128xf32> to vector<1x1x8x128xf32>
    tpu.vector_store %arg5[%c0_122, %c4_123, %c0_124, %c0_125], %77 {strides = array<i32>} : memref<1x8x8x128xf32, #tpu.memory_space<vmem>>, vector<1x1x8x128xf32>,
    %c0_126 = arith.constant 0 : index
    %c0_127 = arith.constant 0 : index
    %c5 = arith.constant 5 : index
    %c0_128 = arith.constant 0 : index
    %c0_129 = arith.constant 0 : index
    %c0_130 = arith.constant 0 : index
    %78 = vector.load %arg2[%c0_126, %c0_127, %c5, %c0_128, %c0_129, %c0_130] : memref<1x1x8x2x8x8xf32, #tpu.memory_space<vmem>>, vector<1x1x1x1x8x8xf32>
    %79 = vector.shape_cast %78 : vector<1x1x1x1x8x8xf32> to vector<8x8xf32>
    %c0_131 = arith.constant 0 : index
    %c0_132 = arith.constant 0 : index
    %c0_133 = arith.constant 0 : index
    %c0_134 = arith.constant 0 : index
    %80 = vector.load %arg3[%c0_131, %c0_132, %c0_133, %c0_134] : memref<1x2x8x128xf32, #tpu.memory_space<vmem>>, vector<1x1x8x128xf32>
    %81 = vector.shape_cast %80 : vector<1x1x8x128xf32> to vector<8x128xf32>
    %cst_135 = arith.constant dense<0.000000e+00> : vector<8x128xf32>
    %82 = tpu.matmul %79, %81, %cst_135 {dimension_numbers = #tpu.dot_dimension_numbers<[1], [0], [0], [1], [0, 0, 1, 1], [], []>} : vector<8x8xf32>, vector<8x128xf32>, vector<8x128xf32> -> vector<8x128xf32>
    %c0_136 = arith.constant 0 : index
    %c0_137 = arith.constant 0 : index
    %c5_138 = arith.constant 5 : index
    %c1_139 = arith.constant 1 : index
    %c0_140 = arith.constant 0 : index
    %c0_141 = arith.constant 0 : index
    %83 = vector.load %arg2[%c0_136, %c0_137, %c5_138, %c1_139, %c0_140, %c0_141] : memref<1x1x8x2x8x8xf32, #tpu.memory_space<vmem>>, vector<1x1x1x1x8x8xf32>
    %84 = vector.shape_cast %83 : vector<1x1x1x1x8x8xf32> to vector<8x8xf32>
    %c0_142 = arith.constant 0 : index
    %c1_143 = arith.constant 1 : index
    %c0_144 = arith.constant 0 : index
    %c0_145 = arith.constant 0 : index
    %85 = vector.load %arg3[%c0_142, %c1_143, %c0_144, %c0_145] : memref<1x2x8x128xf32, #tpu.memory_space<vmem>>, vector<1x1x8x128xf32>
    %86 = vector.shape_cast %85 : vector<1x1x8x128xf32> to vector<8x128xf32>
    %cst_146 = arith.constant dense<0.000000e+00> : vector<8x128xf32>
    %87 = tpu.matmul %84, %86, %cst_146 {dimension_numbers = #tpu.dot_dimension_numbers<[1], [0], [0], [1], [0, 0, 1, 1], [], []>} : vector<8x8xf32>, vector<8x128xf32>, vector<8x128xf32> -> vector<8x128xf32>
    %88 = arith.addf %82, %87 : vector<8x128xf32>
    %89 = arith.addf %88, %2 : vector<8x128xf32>
    %c0_147 = arith.constant 0 : index
    %c5_148 = arith.constant 5 : index
    %c0_149 = arith.constant 0 : index
    %c0_150 = arith.constant 0 : index
    %90 = vector.load %arg5[%c0_147, %c5_148, %c0_149, %c0_150] : memref<1x8x8x128xf32, #tpu.memory_space<vmem>>, vector<1x1x8x128xf32>
    %91 = vector.shape_cast %90 : vector<1x1x8x128xf32> to vector<8x128xf32>
    %92 = vector.shape_cast %89 : vector<8x128xf32> to vector<1x1x8x128xf32>
    tpu.vector_store %arg5[%c0_147, %c5_148, %c0_149, %c0_150], %92 {strides = array<i32>} : memref<1x8x8x128xf32, #tpu.memory_space<vmem>>, vector<1x1x8x128xf32>,
    %c0_151 = arith.constant 0 : index
    %c0_152 = arith.constant 0 : index
    %c6 = arith.constant 6 : index
    %c0_153 = arith.constant 0 : index
    %c0_154 = arith.constant 0 : index
    %c0_155 = arith.constant 0 : index
    %93 = vector.load %arg2[%c0_151, %c0_152, %c6, %c0_153, %c0_154, %c0_155] : memref<1x1x8x2x8x8xf32, #tpu.memory_space<vmem>>, vector<1x1x1x1x8x8xf32>
    %94 = vector.shape_cast %93 : vector<1x1x1x1x8x8xf32> to vector<8x8xf32>
    %c0_156 = arith.constant 0 : index
    %c0_157 = arith.constant 0 : index
    %c0_158 = arith.constant 0 : index
    %c0_159 = arith.constant 0 : index
    %95 = vector.load %arg3[%c0_156, %c0_157, %c0_158, %c0_159] : memref<1x2x8x128xf32, #tpu.memory_space<vmem>>, vector<1x1x8x128xf32>
    %96 = vector.shape_cast %95 : vector<1x1x8x128xf32> to vector<8x128xf32>
    %cst_160 = arith.constant dense<0.000000e+00> : vector<8x128xf32>
    %97 = tpu.matmul %94, %96, %cst_160 {dimension_numbers = #tpu.dot_dimension_numbers<[1], [0], [0], [1], [0, 0, 1, 1], [], []>} : vector<8x8xf32>, vector<8x128xf32>, vector<8x128xf32> -> vector<8x128xf32>
    %c0_161 = arith.constant 0 : index
    %c0_162 = arith.constant 0 : index
    %c6_163 = arith.constant 6 : index
    %c1_164 = arith.constant 1 : index
    %c0_165 = arith.constant 0 : index
    %c0_166 = arith.constant 0 : index
    %98 = vector.load %arg2[%c0_161, %c0_162, %c6_163, %c1_164, %c0_165, %c0_166] : memref<1x1x8x2x8x8xf32, #tpu.memory_space<vmem>>, vector<1x1x1x1x8x8xf32>
    %99 = vector.shape_cast %98 : vector<1x1x1x1x8x8xf32> to vector<8x8xf32>
    %c0_167 = arith.constant 0 : index
    %c1_168 = arith.constant 1 : index
    %c0_169 = arith.constant 0 : index
    %c0_170 = arith.constant 0 : index
    %100 = vector.load %arg3[%c0_167, %c1_168, %c0_169, %c0_170] : memref<1x2x8x128xf32, #tpu.memory_space<vmem>>, vector<1x1x8x128xf32>
    %101 = vector.shape_cast %100 : vector<1x1x8x128xf32> to vector<8x128xf32>
    %cst_171 = arith.constant dense<0.000000e+00> : vector<8x128xf32>
    %102 = tpu.matmul %99, %101, %cst_171 {dimension_numbers = #tpu.dot_dimension_numbers<[1], [0], [0], [1], [0, 0, 1, 1], [], []>} : vector<8x8xf32>, vector<8x128xf32>, vector<8x128xf32> -> vector<8x128xf32>
    %103 = arith.addf %97, %102 : vector<8x128xf32>
    %104 = arith.addf %103, %2 : vector<8x128xf32>
    %c0_172 = arith.constant 0 : index
    %c6_173 = arith.constant 6 : index
    %c0_174 = arith.constant 0 : index
    %c0_175 = arith.constant 0 : index
    %105 = vector.load %arg5[%c0_172, %c6_173, %c0_174, %c0_175] : memref<1x8x8x128xf32, #tpu.memory_space<vmem>>, vector<1x1x8x128xf32>
    %106 = vector.shape_cast %105 : vector<1x1x8x128xf32> to vector<8x128xf32>
    %107 = vector.shape_cast %104 : vector<8x128xf32> to vector<1x1x8x128xf32>
    tpu.vector_store %arg5[%c0_172, %c6_173, %c0_174, %c0_175], %107 {strides = array<i32>} : memref<1x8x8x128xf32, #tpu.memory_space<vmem>>, vector<1x1x8x128xf32>,
    %c0_176 = arith.constant 0 : index
    %c0_177 = arith.constant 0 : index
    %c7 = arith.constant 7 : index
    %c0_178 = arith.constant 0 : index
    %c0_179 = arith.constant 0 : index
    %c0_180 = arith.constant 0 : index
    %108 = vector.load %arg2[%c0_176, %c0_177, %c7, %c0_178, %c0_179, %c0_180] : memref<1x1x8x2x8x8xf32, #tpu.memory_space<vmem>>, vector<1x1x1x1x8x8xf32>
    %109 = vector.shape_cast %108 : vector<1x1x1x1x8x8xf32> to vector<8x8xf32>
    %c0_181 = arith.constant 0 : index
    %c0_182 = arith.constant 0 : index
    %c0_183 = arith.constant 0 : index
    %c0_184 = arith.constant 0 : index
    %110 = vector.load %arg3[%c0_181, %c0_182, %c0_183, %c0_184] : memref<1x2x8x128xf32, #tpu.memory_space<vmem>>, vector<1x1x8x128xf32>
    %111 = vector.shape_cast %110 : vector<1x1x8x128xf32> to vector<8x128xf32>
    %cst_185 = arith.constant dense<0.000000e+00> : vector<8x128xf32>
    %112 = tpu.matmul %109, %111, %cst_185 {dimension_numbers = #tpu.dot_dimension_numbers<[1], [0], [0], [1], [0, 0, 1, 1], [], []>} : vector<8x8xf32>, vector<8x128xf32>, vector<8x128xf32> -> vector<8x128xf32>
    %c0_186 = arith.constant 0 : index
    %c0_187 = arith.constant 0 : index
    %c7_188 = arith.constant 7 : index
    %c1_189 = arith.constant 1 : index
    %c0_190 = arith.constant 0 : index
    %c0_191 = arith.constant 0 : index
    %113 = vector.load %arg2[%c0_186, %c0_187, %c7_188, %c1_189, %c0_190, %c0_191] : memref<1x1x8x2x8x8xf32, #tpu.memory_space<vmem>>, vector<1x1x1x1x8x8xf32>
    %114 = vector.shape_cast %113 : vector<1x1x1x1x8x8xf32> to vector<8x8xf32>
    %c0_192 = arith.constant 0 : index
    %c1_193 = arith.constant 1 : index
    %c0_194 = arith.constant 0 : index
    %c0_195 = arith.constant 0 : index
    %115 = vector.load %arg3[%c0_192, %c1_193, %c0_194, %c0_195] : memref<1x2x8x128xf32, #tpu.memory_space<vmem>>, vector<1x1x8x128xf32>
    %116 = vector.shape_cast %115 : vector<1x1x8x128xf32> to vector<8x128xf32>
    %cst_196 = arith.constant dense<0.000000e+00> : vector<8x128xf32>
    %117 = tpu.matmul %114, %116, %cst_196 {dimension_numbers = #tpu.dot_dimension_numbers<[1], [0], [0], [1], [0, 0, 1, 1], [], []>} : vector<8x8xf32>, vector<8x128xf32>, vector<8x128xf32> -> vector<8x128xf32>
    %118 = arith.addf %112, %117 : vector<8x128xf32>
    %119 = arith.addf %118, %2 : vector<8x128xf32>
    %c0_197 = arith.constant 0 : index
    %c7_198 = arith.constant 7 : index
    %c0_199 = arith.constant 0 : index
    %c0_200 = arith.constant 0 : index
    %120 = vector.load %arg5[%c0_197, %c7_198, %c0_199, %c0_200] : memref<1x8x8x128xf32, #tpu.memory_space<vmem>>, vector<1x1x8x128xf32>
    %121 = vector.shape_cast %120 : vector<1x1x8x128xf32> to vector<8x128xf32>
    %122 = vector.shape_cast %119 : vector<8x128xf32> to vector<1x1x8x128xf32>
    tpu.vector_store %arg5[%c0_197, %c7_198, %c0_199, %c0_200], %122 {strides = array<i32>} : memref<1x8x8x128xf32, #tpu.memory_space<vmem>>, vector<1x1x8x128xf32>,
    return
  }
  func.func @transform_0(%arg0: i32, %arg1: i32) -> (i32, i32, i32, i32, i32, i32) {
    %c0_i32 = arith.constant 0 : i32
    %c0_i32_0 = arith.constant 0 : i32
    %c0_i32_1 = arith.constant 0 : i32
    %c0_i32_2 = arith.constant 0 : i32
    %c0_i32_3 = arith.constant 0 : i32
    return %arg0, %c0_i32, %arg1, %c0_i32_0, %c0_i32_1, %c0_i32_2 : i32, i32, i32, i32, i32, i32
  }
  func.func @transform_1(%arg0: i32, %arg1: i32) -> (i32, i32, i32, i32) {
    %c0_i32 = arith.constant 0 : i32
    %c0_i32_0 = arith.constant 0 : i32
    %c0_i32_1 = arith.constant 0 : i32
    %c0_i32_2 = arith.constant 0 : i32
    %c0_i32_3 = arith.constant 0 : i32
    return %c0_i32, %c0_i32_0, %c0_i32_1, %c0_i32_2 : i32, i32, i32, i32
  }
  func.func @transform_2(%arg0: i32, %arg1: i32) -> (i32, i32) {
    %c0_i32 = arith.constant 0 : i32
    %c0_i32_0 = arith.constant 0 : i32
    %c0_i32_1 = arith.constant 0 : i32
    return %c0_i32, %c0_i32_0 : i32, i32
  }
  func.func @transform_3(%arg0: i32, %arg1: i32) -> (i32, i32, i32, i32) {
    %c0_i32 = arith.constant 0 : i32
    %c0_i32_0 = arith.constant 0 : i32
    %c0_i32_1 = arith.constant 0 : i32
    return %arg0, %arg1, %c0_i32, %c0_i32_0 : i32, i32, i32, i32
  }
}

</mosaic_0001>

<bundles_post_ra>
// kernel: tpu_custom_call.1
= control target key start
LH: loop header
LB: loop body
LE: loop exit
PB: predicated region body
PF: predicated region fallthrough
CT: control target
= control target key end

     0   :  { %8 = vsyncpa [#allocation3], 0  ;;  %s2351_s0 = inlined_call_operand.hbm [shape: f32[2,1,8,2,8,8], index: 0, kind: input, shape index: {}]   ;;  %s2352_s1 = inlined_call_operand.hbm [shape: f32[1,2,8,128], index: 1, kind: input, shape index: {}]   ;;  %s2353_s2 = inlined_call_operand.vmem [shape: f32[1,128], index: 2, kind: input, shape index: {}]   ;;  %s2354_s3 = inlined_call_operand.hbm [shape: f32[2,8,8,128], index: 3, kind: output, shape index: {}]  }
   0x1   :  { %10 = vsyncpa [#allocation3 + $0x1], 0 }
   0x2   :  { %11 = vsyncpa [#allocation6], 0 }
   0x3   :  { %12 = vsyncpa [#allocation4], 0 }
   0x4   :  { %14 = vsyncpa [#allocation4 + $0x1], 0  ;;  %s2009_s12 = smov 0   ;;  %s2011_s13 = smov 0  }
   0x5   :  { %s2013_s14 = smov 0   ;;  %s2015_s15 = smov 0  }
   0x6   :  { %s2017_s16 = smov 0   ;;  %s2019_s17 = smov 0  }
   0x7 LB: > { %s1585_s18 = sadd.s32 4294967295, %s1978_s17   ;;  %s1586_s19 = sadd.s32 4294967294, %s1978_s17   ;;  %s1978_s17 = sphi %s2019_s17, %s20_s17   ;;  %s1974_s16 = sphi %s2017_s16, %s2378_s16   ;;  %s1970_s15 = sphi %s2015_s15, %s2377_s15   ;;  %s1966_s14 = sphi %s2013_s14, %s2376_s14   ;;  %s1962_s13 = sphi %s2011_s13, %s2375_s13   ;;  %s1958_s12 = sphi %s2009_s12, %s2374_s12  }
   0x8   : > { %p54_p0 = scmp.ne.s32.totalorder %s1962_s13, %s1958_s12  ;;  %p2043_p1 = scmp.eq.s32.totalorder %s1585_s18, 0 }
   0x9   : > { %p2047_p2 = scmp.eq.s32.totalorder %s1585_s18, 1  ;;  %p128_p3 = scmp.eq.s32.totalorder %s1586_s19, 1 }
   0xa   : > { %s2359_s20 = scalar_select %p2043_p1, 1, 0 }
   0xb   : > { %s2360_s21 = scalar_select %p2047_p2, 1, 0 }
   0xc   : > { %p2053_p4 = por %p2043_p1, %p54_p0  ;;  %p1587_p5 = scmp.ge.s32.totalorder %s1978_s17, 1 }
   0xd   : > { %p2058_p6 = por %p128_p3, %p54_p0  ;;  %p135_p7 = scmp.lt.s32.totalorder %s1978_s17, 3 }
   0xe   : > { %s2361_s22 = scalar_select %p2053_p4, 1, 0 }
   0xf   : > { %s2362_s23 = scalar_select %p2058_p6, 1, 0 }
  0x10   : > { %p2063_p8 = pnand %p1587_p5, %p135_p7  ;;  %s1980_s25 = smov [#allocation5]  }
  0x11   : > { %s147_s26 = sshll.u32 %s1980_s25, 4  ;;  %s32_s28 = sadd.s32 1, %s1974_s16  ;;  %s148_s26 = int_to_ptr.vmem [resolvable:$true] %s147_s26 }
  0x12   : > { %s2363_s24 = scalar_select %p2063_p8, 1, 0 }
  0x13   : > { %p1763_p9 = pneg %p2063_p8  ;;  %s1834_s4 = scalar_lea.hbm %s2352_s1, 256 }
  0x14   : > { %p1835_p12 = scmp.ne.s32.totalorder %s2352_s1, %s1834_s4  ;;  %p1841_p5 = scmp.lt.u32.totalorder %s1834_s4, %s2352_s1 }
  0x15   : > { %p2072_p11 = pnand %p1763_p9, %p2043_p1 }
  0x17   : > { %p1836_p13 = pneg %p2072_p11 }
  0x19   : > { %p1837_p0 = pnand %p1836_p13, %p1835_p12 }
  0x1b   : > { %p1838_p3 = pneg %p1837_p0 }
  0x1d   : > { %p1843_p7 = pnand %p1841_p5, %p1838_p3 }
  0x1f   : > { %1846 = shalt.err (!%p1843_p7)
}
  0x20   : > { %s1847_s9 = scalar_lea.vmem %s148_s26, 256  ;;  %p1855_p1 = scmp.lt.s32.totalorder %s148_s26, %s148_s26 }
  0x21   : > { %p1848_p9 = scmp.ne.s32.totalorder %s148_s26, %s1847_s9  ;;  %p1856_p4 = scmp.lt.s32.totalorder %s1847_s9, %s1847_s9 }
  0x23   : > { %p1850_p10 = pnand %p1848_p9, %p1836_p13  ;;  %p1857_p8 = por %p1856_p4, %p1855_p1 }
  0x25   : > { %p1851_p6 = pneg %p1850_p10 }
  0x27   : > { %p1858_p2 = pnand %p1857_p8, %p1851_p6 }
  0x29   : > { %1861 = shalt.err (!%p1858_p2)
}
  0x2a   : > { %s1981_s10 = smov 128   ;;  %s1982_s11 = smov 8  }
  0x2b   : > { %1766 = dma.hbm_to_vmem [thread:$0]  (!%p2072_p11), %s2352_s1, 256, %s148_s26, [#allocation6], %s1981_s10, %s1981_s10, %s1982_s11  }
  0x2c   : > { %p34_p1 = scmp.ge.s32.totalorder %s32_s28, 2  ;;  %s41_s25 = sadd.s32 1, %s1966_s14 }
  0x2d   : > { %p48_p2 = scmp.ne.s32.totalorder %s1966_s14, %s1962_s13  ;;  %p49_p4 = scmp.eq.s32.totalorder %s1978_s17, 0 }
  0x2e   : > { %s2380_s28 = smov (%p34_p1, %s32_s28), 0  ;;  %p2366_p8 = scmp.ne.s32.totalorder %s2360_s21, 0 }
  0x2f   : > { %p2102_p6 = por %p49_p4, %p48_p2  ;;  %s36_s30 = ssub.s32 %s1974_s16, %s2380_s28 }
  0x30   : > { %p2108_p10 = por %p2366_p8, %p48_p2  ;;  %p1776_p12 = scmp.lt.s32.totalorder %s1978_s17, 2 }
  0x31   : > { %p39_p11 = scmp.eq.s32.totalorder %s36_s30, 0  ;;  %s164_s26 = sand.u32 1, %s1966_s14  }
  0x32   : > { %s1590_s4 = sshll.u32 %s164_s26, 7  ;;  %s1641_s6 = sshll.u32 %s1974_s16, 11 }
  0x33   : > { %s2117_s5 = scalar_select %p39_p11, %s1966_s14, %s41_s25  }
  0x34   : > { %s2123_s9 = scalar_lea.hbm %s2351_s0, %s1641_s6  ;;  %s168_s21 = scalar_lea.vmem [#allocation2], %s1590_s4 }
  0x35   : > { %s178_s18 = sshll.u32 %s168_s21, 4  ;;  %p2129_p13 = pnand %p1776_p12, %p2102_p6  ;;  %s2125_s18 = int_to_ptr.vmem [resolvable:$true] %s178_s18 }
  0x36   : > { %s2133_s25 = scalar_lea.sflag [#allocation3], %s164_s26  ;;  %s1862_s30 = scalar_lea.hbm %s2123_s9, 2048 }
  0x37   : > { %p1863_p0 = scmp.ne.s32.totalorder %s2123_s9, %s1862_s30  ;;  %p1864_p3 = pneg %p2129_p13 }
  0x38   : > { %s1867_s29 = scalar_lea.hbm %s2351_s0, 4096  ;;  %p1868_p9 = scmp.lt.u32.totalorder %s2123_s9, %s2351_s0 }
  0x39   : > { %p1865_p5 = pnand %p1864_p3, %p1863_p0  ;;  %p1869_p1 = scmp.lt.u32.totalorder %s1867_s29, %s1862_s30 }
  0x3a   : > { %p1871_p4 = scmp.lt.u32.totalorder %s1862_s30, %s2123_s9 }
  0x3b   : > { %p1866_p7 = pneg %p1865_p5  ;;  %p1870_p2 = por %p1869_p1, %p1868_p9 }
  0x3d   : > { %p1872_p6 = por %p1871_p4, %p1870_p2 }
  0x3f   : > { %p1873_p8 = pnand %p1872_p6, %p1866_p7 }
  0x41   : > { %1876 = shalt.err (!%p1873_p8)
}
  0x42   : > { %s1877_s26 = scalar_lea.vmem %s2125_s18, 2048  ;;  %s1983_s21 = smov [#allocation2]  }
  0x43   : > { %p1878_p12 = scmp.ne.s32.totalorder %s2125_s18, %s1877_s26  ;;  %s1882_s4 = sshll.u32 %s1983_s21, 4  ;;  %s1883_s4 = int_to_ptr.vmem [resolvable:$false] %s1882_s4 }
  0x44   : > { %s1884_s6 = scalar_lea.vmem %s1883_s4, 4096  ;;  %p1885_p5 = scmp.lt.s32.totalorder %s2125_s18, %s1883_s4 }
  0x45   : > { %p1880_p11 = pnand %p1878_p12, %p1864_p3  ;;  %p1886_p9 = scmp.lt.s32.totalorder %s1884_s6, %s1877_s26 }
  0x47   : > { %p1881_p0 = pneg %p1880_p11  ;;  %p1887_p1 = por %p1886_p9, %p1885_p5 }
  0x49   : > { %p1888_p2 = pnand %p1887_p1, %p1881_p0 }
  0x4b   : > { %1891 = shalt.err (!%p1888_p2)
}
  0x4c   : > { %1770 = dma.hbm_to_vmem [thread:$0]  (!%p2129_p13), %s2123_s9, 2048, %s2125_s18, %s2133_s25, %s1981_s10, %s1981_s10, %s1982_s11  }
  0x4d   : > { %p2369_p3 = scmp.ne.s32.totalorder %s2363_s24, 0 }
  0x4e   : > { %s2167_s30 = sand.u32 (!%p2369_p3), 1, %s1962_s13   ;;  %p2370_p7 = scmp.ne.s32.totalorder (!%p2369_p3), %s2361_s22, 0 }
  0x4f   : > { %190 = sbr.rel (%p2369_p3) target bundleno = 353 (0x161), region = 32  ;;  %s1594_s29 = sshll.u32 (!%p2369_p3), %s2167_s30, 7 }
  0x50   : > { %s193_s7 = scalar_lea.sflag (!%p2369_p3), [#allocation3], %s2167_s30  ;;  %s2171_s8 = scalar_lea.vmem (!%p2369_p3), [#allocation2], %s1594_s29 }
  0x56   : > { %1945 = dma.done.wait (%p2370_p7), %s193_s7, 2048  }
  0x57   : > { %1947 = vsyncadd (%p2370_p7), %s193_s7, 4294965248  ;;  %p2371_p13 = scmp.ne.s32.totalorder %s2359_s20, 0 }
  0x59   : > { %1949 = dma.done.wait (%p2371_p13), [#allocation6], 256  }
  0x5a   : > { %1951 = vsyncadd (%p2371_p13), [#allocation6], 4294967040  ;;  %v1984_v0 = vmov 0.0   ;;  %vm1985_vm0 = vmmov 0   ;;  %vm238_vm1 = vcmask 64512   ;;  %v2187_v1 = vld [vmem:[#allocation5 + $0x8] sm:$0xff] }
  0x5b   : > { %1675 = vmatprep.subr.mxu0 %v1984_v0  ;;  %1680 = vmatprep.subr.mxu1 %v1984_v0  ;;  %v2189_v2 = vld [vmem:[#allocation5] sm:$0xff]  ;;  %v1598_v3 = vld [vmem:[%s2171_s8 + $0x8] sm:$0xff]  ;;  %v1602_v5 = vld [vmem:[%s2171_s8 + $0x18] sm:$0xff]  ;;  %s1596_s20 = sshll.u32 %s2167_s30, 6  ;;  %s1642_s9 = sshll.u32 %s1970_s15, 10 }
  0x5c   : > { %1677 = vmatprep.mubr.msk.f32.mxu0 %vm1985_vm0, %v1984_v0  ;;  %1682 = vmatprep.mubr.msk.f32.mxu1 %vm1985_vm0, %v1984_v0  ;;  %v232_v4 = vld [vmem:[%s2171_s8] sm:$0xff]  ;;  %v1601_v6 = vld [vmem:[%s2171_s8 + $0x10] sm:$0xff]  ;;  %v1607_v7 = vld [vmem:[%s2171_s8 + $0x28] sm:$0xff]  ;;  %s2285_s10 = scalar_lea.vmem [#allocation7], %s1596_s20  ;;  %s2301_s25 = scalar_lea.hbm %s2354_s3, %s1642_s9 }
  0x5d   : > { %1676 = vmatpush3.msra.mxu0 %v2187_v1  ;;  %1681 = vmatpush3.msra.mxu1 %v2189_v2  ;;  %v1606_v8 = vld [vmem:[%s2171_s8 + $0x20] sm:$0xff]  ;;  %v1612_v9 = vld [vmem:[%s2171_s8 + $0x38] sm:$0xff]  ;;  %v1611_v10 = vld [vmem:[%s2171_s8 + $0x30] sm:$0xff]  ;;  %s1488_s11 = sshll.u32 %s2285_s10, 4  ;;  %s1473_s26 = scalar_lea.sflag [#allocation4], %s2167_s30  ;;  %s2295_s11 = int_to_ptr.vmem [resolvable:$true] %s1488_s11 }
  0x5e   : > { %1678 = vmatmul.mubr.msk.f32.vlgmr.msra.gmra.mrb[0].mxu0 %vm238_vm1, %v1598_v3  ;;  %1683 = vmatmul.mubr.msk.f32.vlgmr.msra.gmra.mrb[0].mxu1 %vm238_vm1, %v232_v4  ;;  %v1617_v11 = vld [vmem:[%s2171_s8 + $0x48] sm:$0xff]  ;;  %v1616_v12 = vld [vmem:[%s2171_s8 + $0x40] sm:$0xff]  ;;  %v1622_v13 = vld [vmem:[%s2171_s8 + $0x58] sm:$0xff]  ;;  %s1892_s15 = scalar_lea.vmem %s2295_s11, 1024  ;;  %s1986_s21 = smov [#allocation7]  }
  0x5f   : > { %1685 = vmatprep.subr.mxu0 %v1984_v0  ;;  %1690 = vmatprep.subr.mxu1 %v1984_v0  ;;  %v1621_v14 = vld [vmem:[%s2171_s8 + $0x50] sm:$0xff]  ;;  %v1627_v15 = vld [vmem:[%s2171_s8 + $0x68] sm:$0xff]  ;;  %v1626_v16 = vld [vmem:[%s2171_s8 + $0x60] sm:$0xff]  ;;  %p1893_p4 = scmp.ne.s32.totalorder %s2295_s11, %s1892_s15  ;;  %s1896_s4 = sshll.u32 %s1986_s21, 4  ;;  %s1897_s4 = int_to_ptr.vmem [resolvable:$false] %s1896_s4 }
  0x60   : > { %1686 = vmatpush3.msra.mxu0 %v2187_v1  ;;  %1691 = vmatpush3.msra.mxu1 %v2189_v2  ;;  %v1632_v17 = vld [vmem:[%s2171_s8 + $0x78] sm:$0xff]  ;;  %v1631_v18 = vld [vmem:[%s2171_s8 + $0x70] sm:$0xff]  ;;  %v1597_v20 = vld [vmem:[%s2353_s2] ss:$0 sm:$0xff]  ;;  %s1898_s6 = scalar_lea.vmem %s1897_s4, 2048  ;;  %p1899_p12 = scmp.lt.s32.totalorder %s2295_s11, %s1897_s4 }
  0x61   : > { %1687 = vmatprep.mubr.msk.f32.mxu0 %vm1985_vm0, %v1984_v0  ;;  %1692 = vmatprep.mubr.msk.f32.mxu1 %vm1985_vm0, %v1984_v0  ;;  %p1894_p6 = pnand %p1893_p4, %p2108_p10  ;;  %p1900_p11 = scmp.lt.s32.totalorder %s1898_s6, %s1892_s15 }
  0x62   : > { %1688 = vmatmul.mubr.msk.f32.vlgmr.msra.gmra.mrb[2].mxu0 %vm238_vm1, %v1602_v5  ;;  %1693 = vmatmul.mubr.msk.f32.vlgmr.msra.gmra.mrb[2].mxu1 %vm238_vm1, %v1601_v6 }
  0x63   : > { %1695 = vmatprep.subr.mxu0 %v1984_v0  ;;  %1700 = vmatprep.subr.mxu1 %v1984_v0  ;;  %p1895_p8 = pneg %p1894_p6  ;;  %p1901_p0 = por %p1900_p11, %p1899_p12 }
  0x64   : > { %1696 = vmatpush3.msra.mxu0 %v2187_v1  ;;  %1701 = vmatpush3.msra.mxu1 %v2189_v2 }
  0x65   : > { %1697 = vmatprep.mubr.msk.f32.mxu0 %vm1985_vm0, %v1984_v0  ;;  %1702 = vmatprep.mubr.msk.f32.mxu1 %vm1985_vm0, %v1984_v0  ;;  %p1902_p5 = pnand %p1901_p0, %p1895_p8 }
  0x66   : > { %1698 = vmatmul.mubr.msk.f32.vlgmr.msra.gmra.mrb[4].mxu0 %vm238_vm1, %v1607_v7  ;;  %1703 = vmatmul.mubr.msk.f32.vlgmr.msra.gmra.mrb[4].mxu1 %vm238_vm1, %v1606_v8 }
  0x67   : > { %1705 = vmatprep.subr.mxu0 %v1984_v0  ;;  %1710 = vmatprep.subr.mxu1 %v1984_v0 }
  0x68   : > { %1706 = vmatpush3.msra.mxu0 %v2187_v1  ;;  %1711 = vmatpush3.msra.mxu1 %v2189_v2 }
  0x69   : > { %1707 = vmatprep.mubr.msk.f32.mxu0 %vm1985_vm0, %v1984_v0  ;;  %1712 = vmatprep.mubr.msk.f32.mxu1 %vm1985_vm0, %v1984_v0 }
  0x6a   : > { %1708 = vmatmul.mubr.msk.f32.vlgmr.msra.gmra.mrb[6].mxu0 %vm238_vm1, %v1612_v9  ;;  %1713 = vmatmul.mubr.msk.f32.vlgmr.msra.gmra.mrb[6].mxu1 %vm238_vm1, %v1611_v10 }
  0x6b   : > { %1715 = vmatprep.subr.mxu0 %v1984_v0  ;;  %1720 = vmatprep.subr.mxu1 %v1984_v0 }
  0x6c   : > { %1716 = vmatpush3.msra.mxu0 %v2187_v1  ;;  %1721 = vmatpush3.msra.mxu1 %v2189_v2 }
  0x6d   : > { %1717 = vmatprep.mubr.msk.f32.mxu0 %vm1985_vm0, %v1984_v0  ;;  %1722 = vmatprep.mubr.msk.f32.mxu1 %vm1985_vm0, %v1984_v0 }
  0x6e   : > { %1718 = vmatmul.mubr.msk.f32.vlgmr.msra.gmra.mrb[8].mxu0 %vm238_vm1, %v1617_v11  ;;  %1723 = vmatmul.mubr.msk.f32.vlgmr.msra.gmra.mrb[8].mxu1 %vm238_vm1, %v1616_v12 }
  0x6f   : > { %1725 = vmatprep.subr.mxu0 %v1984_v0  ;;  %1730 = vmatprep.subr.mxu1 %v1984_v0 }
  0x70   : > { %1726 = vmatpush3.msra.mxu0 %v2187_v1  ;;  %1731 = vmatpush3.msra.mxu1 %v2189_v2 }
  0x71   : > { %1727 = vmatprep.mubr.msk.f32.mxu0 %vm1985_vm0, %v1984_v0  ;;  %1732 = vmatprep.mubr.msk.f32.mxu1 %vm1985_vm0, %v1984_v0 }
  0x72   : > { %1728 = vmatmul.mubr.msk.f32.vlgmr.msra.gmra.mrb[10].mxu0 %vm238_vm1, %v1622_v13  ;;  %1733 = vmatmul.mubr.msk.f32.vlgmr.msra.gmra.mrb[10].mxu1 %vm238_vm1, %v1621_v14 }
  0x73   : > { %1735 = vmatprep.subr.mxu0 %v1984_v0  ;;  %1740 = vmatprep.subr.mxu1 %v1984_v0 }
  0x74   : > { %1736 = vmatpush3.msra.mxu0 %v2187_v1  ;;  %1741 = vmatpush3.msra.mxu1 %v2189_v2 }
  0x75   : > { %1737 = vmatprep.mubr.msk.f32.mxu0 %vm1985_vm0, %v1984_v0  ;;  %1742 = vmatprep.mubr.msk.f32.mxu1 %vm1985_vm0, %v1984_v0 }
  0x76   : > { %1738 = vmatmul.mubr.msk.f32.vlgmr.msra.gmra.mrb[12].mxu0 %vm238_vm1, %v1627_v15  ;;  %1743 = vmatmul.mubr.msk.f32.vlgmr.msra.gmra.mrb[12].mxu1 %vm238_vm1, %v1626_v16 }
  0x77   : > { %1745 = vmatprep.subr.mxu0 %v1984_v0  ;;  %1750 = vmatprep.subr.mxu1 %v1984_v0 }
  0x78   : > { %1746 = vmatpush3.msra.mxu0 %v2187_v1  ;;  %1751 = vmatpush3.msra.mxu1 %v2189_v2 }
  0x79   : > { %1747 = vmatprep.mubr.msk.f32.mxu0 %vm1985_vm0, %v1984_v0  ;;  %1752 = vmatprep.mubr.msk.f32.mxu1 %vm1985_vm0, %v1984_v0 }
  0x7a   : > { %1748 = vmatmul.mubr.msk.f32.vlgmr.msra.gmra.mrb[14].mxu0 %vm238_vm1, %v1632_v17  ;;  %1753 = vmatmul.mubr.msk.f32.vlgmr.msra.gmra.mrb[14].mxu1 %vm238_vm1, %v1631_v18 }
 0x131   : > { %v308_v19 = vpop.f32.mrb[0].mxu0  ;;  %v381_v21 = vpop.f32.mrb[0].mxu1 }
 0x132   : > { %v382_v22 = vadd.f32 %v381_v21, %v308_v19  ;;  %v1679_v23 = vpop.f32.mrb[1].mxu0  ;;  %v1684_v24 = vpop.f32.mrb[1].mxu1 }
 0x134   : > { %v385_v25 = vadd.f32 %v1597_v20, %v382_v22 }
 0x135   : > { %v462_v26 = vpop.f32.mrb[2].mxu0  ;;  %v535_v27 = vpop.f32.mrb[2].mxu1 }
 0x136   : > { %386 = vst [vmem:[%s2285_s10] sm:$0xff] %v385_v25  ;;  %v536_v28 = vadd.f32 %v535_v27, %v462_v26  ;;  %v1689_v29 = vpop.f32.mrb[3].mxu0  ;;  %v1694_v30 = vpop.f32.mrb[3].mxu1 }
 0x138   : > { %v539_v31 = vadd.f32 %v1597_v20, %v536_v28 }
 0x139   : > { %v617_v32 = vpop.f32.mrb[4].mxu0  ;;  %v690_v33 = vpop.f32.mrb[4].mxu1 }
 0x13a   : > { %1605 = vst [vmem:[%s2285_s10 + $0x8] sm:$0xff] %v539_v31  ;;  %v691_v34 = vadd.f32 %v690_v33, %v617_v32  ;;  %v1699_v35 = vpop.f32.mrb[5].mxu0  ;;  %v1704_v36 = vpop.f32.mrb[5].mxu1 }
 0x13c   : > { %v694_v37 = vadd.f32 %v1597_v20, %v691_v34 }
 0x13d   : > { %v772_v38 = vpop.f32.mrb[6].mxu0  ;;  %v845_v39 = vpop.f32.mrb[6].mxu1 }
 0x13e   : > { %1610 = vst [vmem:[%s2285_s10 + $0x10] sm:$0xff] %v694_v37  ;;  %v846_v40 = vadd.f32 %v845_v39, %v772_v38  ;;  %v1709_v41 = vpop.f32.mrb[7].mxu0  ;;  %v1714_v42 = vpop.f32.mrb[7].mxu1 }
 0x140   : > { %v849_v43 = vadd.f32 %v1597_v20, %v846_v40 }
 0x141   : > { %v927_v44 = vpop.f32.mrb[8].mxu0  ;;  %v1000_v45 = vpop.f32.mrb[8].mxu1 }
 0x142   : > { %1615 = vst [vmem:[%s2285_s10 + $0x18] sm:$0xff] %v849_v43  ;;  %v1001_v46 = vadd.f32 %v1000_v45, %v927_v44  ;;  %v1719_v47 = vpop.f32.mrb[9].mxu0  ;;  %v1724_v48 = vpop.f32.mrb[9].mxu1 }
 0x144   : > { %v1004_v49 = vadd.f32 %v1597_v20, %v1001_v46 }
 0x145   : > { %v1082_v50 = vpop.f32.mrb[10].mxu0  ;;  %v1155_v51 = vpop.f32.mrb[10].mxu1 }
 0x146   : > { %1620 = vst [vmem:[%s2285_s10 + $0x20] sm:$0xff] %v1004_v49  ;;  %v1156_v52 = vadd.f32 %v1155_v51, %v1082_v50  ;;  %v1729_v53 = vpop.f32.mrb[11].mxu0  ;;  %v1734_v54 = vpop.f32.mrb[11].mxu1 }
 0x148   : > { %v1159_v55 = vadd.f32 %v1597_v20, %v1156_v52 }
 0x149   : > { %v1237_v56 = vpop.f32.mrb[12].mxu0  ;;  %v1310_v57 = vpop.f32.mrb[12].mxu1 }
 0x14a   : > { %1625 = vst [vmem:[%s2285_s10 + $0x28] sm:$0xff] %v1159_v55  ;;  %v1311_v58 = vadd.f32 %v1310_v57, %v1237_v56  ;;  %v1739_v59 = vpop.f32.mrb[13].mxu0  ;;  %v1744_v60 = vpop.f32.mrb[13].mxu1 }
 0x14c   : > { %v1314_v61 = vadd.f32 %v1597_v20, %v1311_v58 }
 0x14d   : > { %v1392_v62 = vpop.f32.mrb[14].mxu0  ;;  %v1465_v63 = vpop.f32.mrb[14].mxu1 }
 0x14e   : > { %1630 = vst [vmem:[%s2285_s10 + $0x30] sm:$0xff] %v1314_v61  ;;  %v1466_v0 = vadd.f32 %v1465_v63, %v1392_v62  ;;  %v1749_v1 = vpop.f32.mrb[15].mxu0  ;;  %v1754_v2 = vpop.f32.mrb[15].mxu1 }
 0x150   : > { %v1469_v3 = vadd.f32 %v1597_v20, %v1466_v0 }
 0x152   : > { %1635 = vst [vmem:[%s2285_s10 + $0x38] sm:$0xff] %v1469_v3 }
 0x153   : > { %1905 = shalt.err (!%p1902_p5)
}
 0x154   : > { %s1906_s29 = scalar_lea.hbm %s2301_s25, 1024  ;;  %s1910_s20 = scalar_lea.hbm %s2354_s3, 2048 }
 0x155   : > { %p1907_p9 = scmp.ne.s32.totalorder %s2301_s25, %s1906_s29  ;;  %p1911_p3 = scmp.lt.u32.totalorder %s2301_s25, %s2354_s3 }
 0x156   : > { %p1912_p7 = scmp.lt.u32.totalorder %s1910_s20, %s1906_s29  ;;  %p1914_p4 = scmp.lt.u32.totalorder %s1906_s29, %s2301_s25 }
 0x157   : > { %p1908_p1 = pnand %p1907_p9, %p2108_p10 }
 0x158   : > { %p1913_p13 = por %p1912_p7, %p1911_p3 }
 0x159   : > { %p1909_p2 = pneg %p1908_p1 }
 0x15a   : > { %p1915_p6 = por %p1914_p4, %p1913_p13 }
 0x15c   : > { %p1916_p8 = pnand %p1915_p6, %p1909_p2 }
 0x15e   : > { %1919 = shalt.err (!%p1916_p8)
}
 0x15f   : > { %s1987_s10 = smov 128   ;;  %s1988_s9 = smov 8  }
 0x160   : > { %1761 = dma.vmem_to_hbm [thread:$0]  (%p2108_p10), %s2295_s11, 1024, %s2301_s25, %s1473_s26, %s1987_s10, %s1987_s10, %s1988_s9  }
 0x161 PF: > { %s1503_s18 = sand.u32 1, %s1958_s12   ;;  %p2372_p12 = scmp.ne.s32.totalorder %s2362_s23, 0 }
 0x162   : > { %p2373_p11 = scmp.ge.s32.totalorder %s1978_s17, 2  ;;  %s1504_s19 = scalar_lea.sflag [#allocation4], %s1503_s18 }
 0x164   : > { %p1772_p0 = pnand %p2373_p11, %p2372_p12 }
 0x166   : > { %1953 = dma.done.wait (!%p1772_p0), %s1504_s19, 1024  }
 0x167   : > { %1955 = vsyncadd (!%p1772_p0), %s1504_s19, 4294966272  ;;  %s20_s17 = sadd.s32 1, %s1978_s17   ;;  %s2374_s12 = smov %s1962_s13 }
 0x168   : > { %p17_p5 = scmp.ge.s32.totalorder %s20_s17, 4   ;;  %s2375_s13 = smov %s1966_s14 }
 0x169   : > { %s2376_s14 = smov %s2117_s5  ;;  %s2377_s15 = smov %s1974_s16 }
 0x16a   : > { %s2378_s16 = smov %s2380_s28  ;;  %19 = sbr.rel (!%p17_p5) target bundleno = 7 (0x7), region = 104 }
 0x171   :  { %1509 = vsyncpa [#allocation3], 1 }
 0x172   :  { %1511 = vsyncpa [#allocation3 + $0x1], 1 }
 0x173   :  { %1512 = vsyncpa [#allocation6], 1 }
 0x174   :  { %1513 = vsyncpa [#allocation4], 1 }
 0x175   :  { %1515 = vsyncpa [#allocation4 + $0x1], 1 }

</bundles_post_ra>
